<compile_context>
chip_gen: v6e
topology: v6e:2x2x1
jax: 0.10.0
libtpu: 0.0.40
codegen_flags: <defaults>
</compile_context>

<pallas_src>
import functools

import jax
import jax.numpy as jnp
from jax.experimental import pallas as pl
from jax.experimental.pallas import tpu as pltpu

_MAX_BLOCK_K = 8192                    # preferred lane-tile width
_TILE_BUDGET_BYTES = 4 * 1024 * 1024   # per input tile (x2 inputs x2 buffers = 16 MiB)
_VMEM_LIMIT_BYTES = 40 * 1024 * 1024   # > all scoped defaults, < v7x 64 MiB physical


def _mse_rgb_kernel(o_ref, t_ref, out_ref, *, bk, k_rgba, k_per_split):
    """Accumulate per-row sum of squared errors for one (split, batch, K) tile."""
    s = pl.program_id(0)          # K-split index (dual-TC utilisation on v7x)
    k = pl.program_id(2)          # K tile index within this split

    @pl.when(k == 0)
    def _init():
        out_ref[...] = jnp.zeros_like(out_ref)

    d = o_ref[...].astype(jnp.float32) - t_ref[...].astype(jnp.float32)
    col0 = (s * k_per_split + k) * bk     # logical first column of this tile
    rem = k_rgba - col0                   # valid (RGBA) columns left in this tile

    @pl.when(rem >= bk)                   # interior tile: no masking needed
    def _full_tile():
        out_ref[...] += jnp.sum(d * d, axis=-1, keepdims=True)

    @pl.when(rem < bk)                    # tail / phantom tile: mask lanes >= rem
    def _tail_tile():
        lane = jax.lax.broadcasted_iota(jnp.int32, d.shape, d.ndim - 1)
        dm = jnp.where(lane < rem, d, 0.0)
        out_ref[...] += jnp.sum(dm * dm, axis=-1, keepdims=True)


def _pick_blocks(n, k_rgba, k_cols, itemsize, tile_budget):
    """Choose (bn, bk) obeying TPU tiling rules and the per-tile VMEM budget."""
    sub = {4: 8, 2: 16, 1: 32}.get(itemsize, 8)   # sublane packing granule
    if k_cols <= 128:
        bk = k_cols                               # full-extent lane block (legal)
        bk_cap = bk
    else:
        # Multiple of 128; never wider than the RGBA span rounded up, and keep
        # the first block fully in-bounds of the (N, C*H*W) view.
        bk_cap = min(pl.cdiv(k_rgba, 128) * 128, (k_cols // 128) * 128)
        bk = min(bk_cap, _MAX_BLOCK_K)
    # Grow the batch tile toward the budget (multiple of `sub`, or the full
    # batch extent, which is always a legal sublane block).
    bn_budget = max(sub, (tile_budget // (bk * itemsize)) // sub * sub)
    bn = n if n <= bn_budget else bn_budget
    # If a small batch pinned bn, spend the leftover budget on a wider K tile.
    if bn == n and k_cols > 128:
        bk = min(bk_cap, max(bk, (tile_budget // (bn * itemsize)) // 128 * 128))
    return bn, bk


@functools.partial(jax.jit, static_argnames=("tile_budget_bytes",))
def mse_rgb_loss(out, target, *, tile_budget_bytes=_TILE_BUDGET_BYTES):
    assert out.shape == target.shape and out.dtype == target.dtype
    n, c, h, w = out.shape
    assert c >= 4, "MSE_rgb_loss compares the first 4 channels"
    k_rgba = 4 * h * w                    # true reduction length (first 4 channels)
    k_cols = c * h * w
    itemsize = jnp.dtype(out.dtype).itemsize

    # Free views: row-major NCHW keeps the first-4-channel span contiguous in
    # columns [0, 4*H*W); no HBM copy, no slicing / padding pre-pass.
    o2 = out.reshape(n, k_cols)
    t2 = target.reshape(n, k_cols)

    bn, bk = _pick_blocks(n, k_rgba, k_cols, itemsize, tile_budget_bytes)
    n_blocks = pl.cdiv(n, bn)
    k_tiles = pl.cdiv(k_rgba, bk)
    # Give both v7x TensorCores work when the batch axis has a single block.
    num_splits = 2 if (n_blocks == 1 and k_tiles >= 2) else 1
    k_per_split = pl.cdiv(k_tiles, num_splits)
    grid = (num_splits, n_blocks, k_per_split)

    needs_clamp = (k_per_split * num_splits) != k_tiles

    def in_map(s, i, k):
        kk = s * k_per_split + k
        if needs_clamp:
            kk = jnp.minimum(kk, k_tiles - 1)   # phantom tiles re-read the last
        return (i, kk)                           # tile; the kernel masks them to 0

    kernel = functools.partial(_mse_rgb_kernel, bk=bk, k_rgba=k_rgba,
                               k_per_split=k_per_split)
    sums = pl.pallas_call(
        kernel,
        out_shape=jax.ShapeDtypeStruct((num_splits, n, 1), jnp.float32),
        grid_spec=pltpu.PrefetchScalarGridSpec(
            num_scalar_prefetch=0,
            grid=grid,
            in_specs=[pl.BlockSpec((bn, bk), in_map),
                      pl.BlockSpec((bn, bk), in_map)],
            out_specs=pl.BlockSpec((None, bn, 1), lambda s, i, k: (s, i, 0)),
        ),
        compiler_params=pltpu.CompilerParams(
            dimension_semantics=("parallel", "parallel", "arbitrary"),
            vmem_limit_bytes=_VMEM_LIMIT_BYTES),
        cost_estimate=pl.CostEstimate(
            flops=3 * n * k_rgba,
            transcendentals=0,
            bytes_accessed=2 * n * k_rgba * itemsize + num_splits * n * 4),
    )(o2, t2)

    loss = jnp.sum(sums, axis=0)[:, 0] * (1.0 / float(k_rgba))   # (N,)
    return loss.astype(out.dtype)


def _ref(out, target):
    o = out[:, :4].astype(jnp.float32)
    t = target[:, :4].astype(jnp.float32)
    return jnp.mean((o - t) ** 2, axis=(-3, -2, -1))


if __name__ == "__main__":
    key = jax.random.PRNGKey(0)
    keys = jax.random.split(key, 12)

    # 1) Base case: NCHW, 4 channels, lane-aligned spatial size.
    n, c, h, w = 2, 4, 16, 16
    a = jax.random.normal(keys[0], (n, c, h, w), jnp.float32)
    b = jax.random.normal(keys[1], (n, c, h, w), jnp.float32)
    r = jax.block_until_ready(mse_rgb_loss(a, b))
    assert r.shape == (n,)
    assert bool(jnp.allclose(r, _ref(a, b), rtol=1e-5, atol=1e-6))

    # 2) C > 4: extra channels must be ignored (and never read from HBM).
    a = jax.random.normal(keys[2], (2, 8, 16, 16), jnp.float32)
    b = jax.random.normal(keys[3], (2, 8, 16, 16), jnp.float32)
    r = jax.block_until_ready(mse_rgb_loss(a, b))
    assert bool(jnp.allclose(r, _ref(a, b), rtol=1e-5, atol=1e-6))

    # 3) Non-128-aligned RGBA span: exercises the in-kernel tail mask,
    #    the edge-partial K block, and the 2-way K split (single batch block).
    a = jax.random.normal(keys[4], (2, 4, 10, 10), jnp.float32)
    b = jax.random.normal(keys[5], (2, 4, 10, 10), jnp.float32)
    r = jax.block_until_ready(mse_rgb_loss(a, b))
    assert bool(jnp.allclose(r, _ref(a, b), rtol=1e-5, atol=1e-6))

    # 4) bf16 inputs: 16-row sublane granule + itemsize-aware cost estimate.
    a = jax.random.normal(keys[6], (4, 6, 12, 12), jnp.bfloat16)
    b = jax.random.normal(keys[7], (4, 6, 12, 12), jnp.bfloat16)
    r = jax.block_until_ready(mse_rgb_loss(a, b))
    assert bool(jnp.allclose(r.astype(jnp.float32), _ref(a, b), rtol=2e-2, atol=2e-2))

    # 5) Small VMEM budget to force multi-tile K, an uneven 2-way K split
    #    (index-clamped phantom tile), and K-axis accumulation.
    a = jax.random.normal(keys[8], (2, 4, 72, 72), jnp.float32)
    b = jax.random.normal(keys[9], (2, 4, 72, 72), jnp.float32)
    r = jax.block_until_ready(mse_rgb_loss(a, b, tile_budget_bytes=64 * 1024))
    assert bool(jnp.allclose(r, _ref(a, b), rtol=1e-5, atol=1e-6))

    # 6) N not a multiple of the batch tile: padded rows of the last batch
    #    block must be clipped on writeback.
    a = jax.random.normal(keys[10], (20, 4, 36, 36), jnp.float32)
    b = jax.random.normal(keys[11], (20, 4, 36, 36), jnp.float32)
    r = jax.block_until_ready(mse_rgb_loss(a, b, tile_budget_bytes=64 * 1024))
    assert r.shape == (20,)
    assert bool(jnp.allclose(r, _ref(a, b), rtol=1e-5, atol=1e-6))

    print("KERNEL_OK")
</pallas_src>

<mosaic_0001>
module attributes {stable_mosaic.version = 11 : i64} {
  func.func @_mse_rgb_kernel(%arg0: i32, %arg1: i32, %arg2: i32, %arg3: memref<2x1024xf32, #tpu.memory_space<vmem>>, %arg4: memref<2x1024xf32, #tpu.memory_space<vmem>>, %arg5: memref<1x2x1xf32, #tpu.memory_space<vmem>>) attributes {dimension_semantics = [#tpu.dimension_semantics<parallel>, #tpu.dimension_semantics<parallel>, #tpu.dimension_semantics<arbitrary>], iteration_bounds = array<i64: 1, 1, 1>, scalar_prefetch = 0 : i64, scratch_operands = 0 : i64, tpu.core_type = #tpu.core_type<tc>, window_params = [{transform_indices = @transform_0, window_bounds = array<i64: 2, 1024>}, {transform_indices = @transform_1, window_bounds = array<i64: 2, 1024>}, {transform_indices = @transform_2, window_bounds = array<i64: 1, 2, 1>}]} {
    %c0_i32 = arith.constant 0 : i32
    %0 = arith.cmpi eq, %arg2, %c0_i32 : i32
    %1 = arith.extui %0 : i1 to i32
    %c0_i32_0 = arith.constant 0 : i32
    %2 = arith.cmpi ne, %1, %c0_i32_0 : i32
    scf.if %2 {
      %cst = arith.constant 0.000000e+00 : f32
      %16 = vector.broadcast %cst : f32 to vector<2x1xf32>
      %c0_9 = arith.constant 0 : index
      %c0_10 = arith.constant 0 : index
      %c0_11 = arith.constant 0 : index
      %17 = vector.load %arg5[%c0_9, %c0_10, %c0_11] : memref<1x2x1xf32, #tpu.memory_space<vmem>>, vector<1x2x1xf32>
      %18 = vector.shape_cast %17 : vector<1x2x1xf32> to vector<2x1xf32>
      %19 = vector.shape_cast %16 : vector<2x1xf32> to vector<1x2x1xf32>
      tpu.vector_store %arg5[%c0_9, %c0_10, %c0_11], %19 {strides = array<i32>} : memref<1x2x1xf32, #tpu.memory_space<vmem>>, vector<1x2x1xf32>,
    } else {
    }
    %c0 = arith.constant 0 : index
    %c0_1 = arith.constant 0 : index
    %3 = vector.load %arg3[%c0, %c0_1] : memref<2x1024xf32, #tpu.memory_space<vmem>>, vector<2x1024xf32>
    %c0_2 = arith.constant 0 : index
    %c0_3 = arith.constant 0 : index
    %4 = vector.load %arg4[%c0_2, %c0_3] : memref<2x1024xf32, #tpu.memory_space<vmem>>, vector<2x1024xf32>
    %5 = arith.subf %3, %4 : vector<2x1024xf32>
    %c1_i32 = arith.constant 1 : i32
    %6 = arith.muli %arg0, %c1_i32 : i32
    %7 = arith.addi %6, %arg2 : i32
    %c1024_i32 = arith.constant 1024 : i32
    %8 = arith.muli %7, %c1024_i32 : i32
    %c1024_i32_4 = arith.constant 1024 : i32
    %9 = arith.subi %c1024_i32_4, %8 : i32
    %c1024_i32_5 = arith.constant 1024 : i32
    %10 = arith.cmpi sge, %9, %c1024_i32_5 : i32
    %11 = arith.extui %10 : i1 to i32
    %c0_i32_6 = arith.constant 0 : i32
    %12 = arith.cmpi ne, %11, %c0_i32_6 : i32
    scf.if %12 {
      %c0_9 = arith.constant 0 : index
      %c0_10 = arith.constant 0 : index
      %c0_11 = arith.constant 0 : index
      %16 = vector.load %arg5[%c0_9, %c0_10, %c0_11] : memref<1x2x1xf32, #tpu.memory_space<vmem>>, vector<1x2x1xf32>
      %17 = vector.shape_cast %16 : vector<1x2x1xf32> to vector<2x1xf32>
      %18 = arith.mulf %5, %5 : vector<2x1024xf32>
      %cst = arith.constant dense<0.000000e+00> : vector<2xf32>
      %19 = vector.multi_reduction <add>, %18, %cst [1] : vector<2x1024xf32> to vector<2xf32>
      %20 = vector.shape_cast %19 : vector<2xf32> to vector<2x1xf32>
      %21 = arith.addf %17, %20 : vector<2x1xf32>
      %c0_12 = arith.constant 0 : index
      %c0_13 = arith.constant 0 : index
      %c0_14 = arith.constant 0 : index
      %22 = vector.load %arg5[%c0_12, %c0_13, %c0_14] : memref<1x2x1xf32, #tpu.memory_space<vmem>>, vector<1x2x1xf32>
      %23 = vector.shape_cast %22 : vector<1x2x1xf32> to vector<2x1xf32>
      %24 = vector.shape_cast %21 : vector<2x1xf32> to vector<1x2x1xf32>
      tpu.vector_store %arg5[%c0_12, %c0_13, %c0_14], %24 {strides = array<i32>} : memref<1x2x1xf32, #tpu.memory_space<vmem>>, vector<1x2x1xf32>,
    } else {
    }
    %c1024_i32_7 = arith.constant 1024 : i32
    %13 = arith.cmpi slt, %9, %c1024_i32_7 : i32
    %14 = arith.extui %13 : i1 to i32
    %c0_i32_8 = arith.constant 0 : i32
    %15 = arith.cmpi ne, %14, %c0_i32_8 : i32
    scf.if %15 {
      %16 = tpu.iota {dimensions = array<i32: 1>} : vector<2x1024xi32>
      %17 = vector.broadcast %9 : i32 to vector<2x1024xi32>
      %18 = arith.cmpi slt, %16, %17 : vector<2x1024xi32>
      %cst = arith.constant 0.000000e+00 : f32
      %19 = vector.broadcast %cst : f32 to vector<2x1024xf32>
      %20 = arith.select %18, %5, %19 : vector<2x1024xi1>, vector<2x1024xf32>
      %c0_9 = arith.constant 0 : index
      %c0_10 = arith.constant 0 : index
      %c0_11 = arith.constant 0 : index
      %21 = vector.load %arg5[%c0_9, %c0_10, %c0_11] : memref<1x2x1xf32, #tpu.memory_space<vmem>>, vector<1x2x1xf32>
      %22 = vector.shape_cast %21 : vector<1x2x1xf32> to vector<2x1xf32>
      %23 = arith.mulf %20, %20 : vector<2x1024xf32>
      %cst_12 = arith.constant dense<0.000000e+00> : vector<2xf32>
      %24 = vector.multi_reduction <add>, %23, %cst_12 [1] : vector<2x1024xf32> to vector<2xf32>
      %25 = vector.shape_cast %24 : vector<2xf32> to vector<2x1xf32>
      %26 = arith.addf %22, %25 : vector<2x1xf32>
      %c0_13 = arith.constant 0 : index
      %c0_14 = arith.constant 0 : index
      %c0_15 = arith.constant 0 : index
      %27 = vector.load %arg5[%c0_13, %c0_14, %c0_15] : memref<1x2x1xf32, #tpu.memory_space<vmem>>, vector<1x2x1xf32>
      %28 = vector.shape_cast %27 : vector<1x2x1xf32> to vector<2x1xf32>
      %29 = vector.shape_cast %26 : vector<2x1xf32> to vector<1x2x1xf32>
      tpu.vector_store %arg5[%c0_13, %c0_14, %c0_15], %29 {strides = array<i32>} : memref<1x2x1xf32, #tpu.memory_space<vmem>>, vector<1x2x1xf32>,
    } else {
    }
    return
  }
  func.func @transform_0(%arg0: i32, %arg1: i32, %arg2: i32) -> (i32, i32) {
    %c1_i32 = arith.constant 1 : i32
    %0 = arith.muli %arg0, %c1_i32 : i32
    %1 = arith.addi %0, %arg2 : i32
    %c0_i32 = arith.constant 0 : i32
    return %arg1, %1 : i32, i32
  }
  func.func @transform_1(%arg0: i32, %arg1: i32, %arg2: i32) -> (i32, i32) {
    %c1_i32 = arith.constant 1 : i32
    %0 = arith.muli %arg0, %c1_i32 : i32
    %1 = arith.addi %0, %arg2 : i32
    %c0_i32 = arith.constant 0 : i32
    return %arg1, %1 : i32, i32
  }
  func.func @transform_2(%arg0: i32, %arg1: i32, %arg2: i32) -> (i32, i32, i32) {
    %c0_i32 = arith.constant 0 : i32
    %c0_i32_0 = arith.constant 0 : i32
    return %arg0, %arg1, %c0_i32 : i32, i32, i32
  }
}

</mosaic_0001>

<bundles_post_ra>
// kernel: mse_rgb_loss.1
= control target key start
LH: loop header
LB: loop body
LE: loop exit
PB: predicated region body
PF: predicated region fallthrough
CT: control target
= control target key end

     0   :  { %v83_v0 = vlaneseq  ;;  %vm59_vm0 = vcmask 1024   ;;  %v264_v4 = vmov 1983009808   ;;  %v265_v9 = vmov 0.0   ;;  %s312_s0 = inlined_call_operand.vmem [shape: f32[2,1024], index: 0, kind: input, shape index: {}]   ;;  %s313_s1 = inlined_call_operand.vmem [shape: f32[2,1024], index: 1, kind: input, shape index: {}]   ;;  %s314_s2 = inlined_call_operand.vmem [shape: f32[1,2,1], index: 2, kind: output, shape index: {}]  }
   0x1   :  { %v61_v1 = vld [vmem:[%s312_s0] sm:$0xff]  ;;  %v62_v2 = vld [vmem:[%s312_s0 + $0x8] sm:$0xff]  ;;  %v81_v5 = vunpack.c.l.s4 %v264_v4  ;;  %60 = vst.msk [vmem:[%s314_s2] sm:$0x3] %vm59_vm0, %v265_v9  ;;  %vm121_vm1 = vcmask 1041408  }
   0x2   :  { %v63_v3 = vld [vmem:[%s313_s1] sm:$0xff]  ;;  %v64_v6 = vld [vmem:[%s313_s1 + $0x8] sm:$0xff]  ;;  %v84_v8 = vshrl.u32 %v83_v0, 7 }
   0x3   :  { %v65_v7 = vsub.f32 %v61_v1, %v63_v3  ;;  %v66_v10 = vsub.f32 %v62_v2, %v64_v6  ;;  %v82_v11 = vunpack.c.0.s8 %v81_v5 }
   0x5   :  { %v75_v12 = vmul.f32 %v65_v7, %v65_v7  ;;  %v76_v13 = vmul.f32 %v66_v10, %v66_v10  ;;  %v85_v14 = vsub.s32 %v82_v11, %v84_v8 }
   0x7   :  { %v79_v15 = vcombine.high %v75_v12, %v75_v12  ;;  %v86_v16 = vrot.slane %v75_v12, %v85_v14  ;;  %v96_v19 = vcombine.high %v76_v13, %v76_v13  ;;  %v103_v20 = vrot.slane %v76_v13, %v85_v14 }
   0x8   :  { %v74_v40 = vld [vmem:[%s314_s2] sm:$0x3] }
   0x9   :  { %v93_v17 = vrot.slane %v79_v15, %v85_v14  ;;  %v94_v18 = vcombine.high %v86_v16, %v86_v16  ;;  %v122_v21 = vsel %vm121_vm1, %v86_v16, 0.0  ;;  %v110_v26 = vrot.slane %v96_v19, %v85_v14 }
   0xa   :  { %v111_v27 = vcombine.high %v103_v20, %v103_v20  ;;  %v129_v30 = vsel %vm121_vm1, %v103_v20, 0.0 }
   0xb   :  { %v95_v22 = vcombine.high %v93_v17, %v93_v17  ;;  %v123_v23 = vsel %vm121_vm1, %v94_v18, 0.0  ;;  %v125_v24 = vsel %vm121_vm1, %v93_v17, 0.0  ;;  %v112_v32 = vcombine.high %v110_v26, %v110_v26 }
   0xc   :  { %v124_v25 = vadd.f32 %v123_v23, %v122_v21  ;;  %v131_v33 = vsel %vm121_vm1, %v111_v27, 0.0  ;;  %v133_v35 = vsel %vm121_vm1, %v110_v26, 0.0 }
   0xd   :  { %v127_v28 = vsel %vm121_vm1, %v95_v22, 0.0  ;;  %v135_v37 = vsel %vm121_vm1, %v112_v32, 0.0 }
   0xe   :  { %v126_v29 = vadd.f32 %v125_v24, %v124_v25 }
  0x10   :  { %v128_v31 = vadd.f32 %v127_v28, %v126_v29 }
  0x12   :  { %v130_v34 = vadd.f32 %v129_v30, %v128_v31 }
  0x14   :  { %v132_v36 = vadd.f32 %v131_v33, %v130_v34 }
  0x16   :  { %v134_v38 = vadd.f32 %v133_v35, %v132_v36 }
  0x18   :  { %v136_v39 = vadd.f32 %v135_v37, %v134_v38 }
  0x1a   :  { %137 = vadd.xlane.f32.xlu0 %v136_v39 }
  0xa3   :  { %v138_v41 = vpop.xlane.xlu0 %137 }
  0xa4   :  { %v139_v42 = vadd.f32 %v138_v41, %v74_v40 }
  0xa6   :  { %141 = vst.msk [vmem:[%s314_s2] sm:$0x3] %vm59_vm0, %v139_v42 }

</bundles_post_ra>
